<compile_context>
chip_gen: v5e
topology: v5e:2x2
jax: 0.10.0
libtpu: 0.0.40
codegen_flags: <defaults>
</compile_context>

<pallas_src>
import jax
import jax.numpy as jnp
from jax.experimental import pallas as pl
from jax.experimental.pallas import tpu as pltpu

SMOOTH = 1e-6

_LANE = 128
_ROW_ALIGN = 16                 # sublane alignment good for f32 (8) and bf16 (16)
_MAX_TILE_ROWS = 2048           # 256K pixels per tile (amortize grid overhead)
_VMEM_LIMIT = 40 * 1024 * 1024  # explicit scoped-VMEM limit: above v5e's 16 MiB
                                # default, below v7x's 64 MiB physical


def _round_up(x, m):
    return -(-x // m) * m


def _make_kernel(C, HW, tile_rows, need_mask):
    """Builds the per-tile statistics kernel (C, HW, tile size are static)."""
    T = tile_rows

    def kernel(logits_ref, label_ref, is1_ref, out_ref):
        # logits_ref: (1, C, T, 128) native dtype (bf16 or f32)
        # label_ref / is1_ref: (1, T, 128) bf16 (exact 0/1)
        # out_ref: (1, 1, 40, 128) f32 = five (8, 128) vector partial sums
        xs = [logits_ref[0, c].astype(jnp.float32) for c in range(C)]

        # Channel reductions as unrolled elementwise VPU ops (no XLU).
        m = xs[0]
        for c in range(1, C):
            m = jnp.maximum(m, xs[c])

        d1 = xs[1] - m                       # shifted class-1 logit (reused)
        e1 = jnp.exp(d1)
        denom = jnp.exp(xs[0] - m) + e1
        for c in range(2, C):
            denom = denom + jnp.exp(xs[c] - m)

        # approx=True -> single EUP vrcp in an otherwise idle slot (v7x win,
        # neutral elsewhere). Error ~2^-12 is negligible for the loss.
        p1 = e1 * pl.reciprocal(denom, approx=True)
        neg_logp1 = jnp.log(denom) - d1      # -log softmax(class 1)

        label = label_ref[0].astype(jnp.float32)   # (T, 128)
        is1 = is1_ref[0].astype(jnp.float32)       # (T, 128)

        terms = (p1 * label,        # dice intersection
                 p1,                # dice pred sum
                 label,             # dice label sum
                 is1 * neg_logp1,   # weighted-CE numerator
                 is1)               # weighted-CE denominator

        if need_mask:
            # Ragged last tile and/or lane pad: SELECT (not multiply) so that
            # NaN/Inf garbage from out-of-bounds block rows cannot poison sums.
            base = pl.program_id(1) * (T * _LANE)
            pix = (base
                   + jax.lax.broadcasted_iota(jnp.int32, (T, _LANE), 0) * _LANE
                   + jax.lax.broadcasted_iota(jnp.int32, (T, _LANE), 1))
            valid = pix < HW
            terms = tuple(jnp.where(valid, t, 0.0) for t in terms)

        if T % 8 == 0:
            # (T,128) -> (8,128): pure vreg-wise VPU adds; wrapper finishes
            # the tiny cross-lane reduction.
            for s, t in enumerate(terms):
                out_ref[0, 0, 8 * s:8 * (s + 1), :] = jnp.sum(
                    t.reshape(T // 8, 8, _LANE), axis=0)
        else:
            # Tiny-image path (rows < 16 and not 8-aligned): store raw rows,
            # zero the rest of the block; the wrapper sums everything anyway.
            out_ref[...] = jnp.zeros_like(out_ref)
            for s, t in enumerate(terms):
                out_ref[0, 0, 8 * s:8 * s + T, :] = t

    return kernel


def channel1_loss(logits, targets, smooth=SMOOTH):
    """logits: [B, C, H, W] (f32 or bf16); targets: [B, H, W, C] (one-hot-ish)."""
    B, C, H, W = logits.shape
    HW = H * W

    # --- lane-dense pixel layout: HW -> (rows, 128) ---------------------------
    rows = pl.cdiv(HW, _LANE)
    lane_pad = rows * _LANE - HW

    # --- tile the rows axis: prefer the biggest tile, mask the ragged tail ----
    if rows > _MAX_TILE_ROWS:
        tile_rows = _MAX_TILE_ROWS
    elif B == 1 and rows >= 2 * _ROW_ALIGN:
        # Split a single batch item into >=2 grid steps so both v7x
        # TensorCores get work.
        tile_rows = _round_up(-(-rows // 2), _ROW_ALIGN)
    elif rows >= _ROW_ALIGN:
        tile_rows = (rows // _ROW_ALIGN) * _ROW_ALIGN
    else:
        tile_rows = rows            # tiny image: one full-extent block
    n_tiles = pl.cdiv(rows, tile_rows)
    need_mask = (n_tiles * tile_rows != rows) or (lane_pad != 0)

    # --- logits: [B,C,H,W] -> [B,C,rows,128] in NATIVE dtype (no upcast) ------
    logits_flat = logits.reshape(B, C, HW)
    # Only the two target-derived streams the kernel needs (no full NHWC->NCHW
    # transpose). 0/1 masks are exact in bf16.
    label = targets[..., 1].astype(jnp.bfloat16).reshape(B, HW)
    is1 = (jnp.argmax(targets, axis=-1) == 1).reshape(B, HW).astype(jnp.bfloat16)
    if lane_pad:
        # Only when H*W is not a multiple of 128 (rare for segmentation
        # shapes). Padded values are ignored by the in-kernel validity mask.
        # TODO(synk): this pad is one extra HBM copy of logits; unavoidable
        # because the lane-dense (rows, 128) reshape needs HW % 128 == 0.
        logits_flat = jnp.pad(logits_flat, ((0, 0), (0, 0), (0, lane_pad)))
        label = jnp.pad(label, ((0, 0), (0, lane_pad)))
        is1 = jnp.pad(is1, ((0, 0), (0, lane_pad)))
    logits_t = logits_flat.reshape(B, C, rows, _LANE)
    label_t = label.reshape(B, rows, _LANE)
    is1_t = is1.reshape(B, rows, _LANE)

    elems = B * rows * _LANE
    cost = pl.CostEstimate(
        flops=25 * elems,
        transcendentals=(C + 2) * elems,
        bytes_accessed=int(C * elems * jnp.dtype(logits_t.dtype).itemsize
                           + 2 * elems * 2
                           + B * n_tiles * 40 * _LANE * 4))

    parts = pl.pallas_call(
        _make_kernel(C, HW, tile_rows, need_mask),
        out_shape=jax.ShapeDtypeStruct((B, n_tiles, 40, _LANE), jnp.float32),
        grid=(B, n_tiles),
        in_specs=[
            pl.BlockSpec((1, C, tile_rows, _LANE), lambda b, h: (b, 0, h, 0)),
            pl.BlockSpec((1, tile_rows, _LANE), lambda b, h: (b, h, 0)),
            pl.BlockSpec((1, tile_rows, _LANE), lambda b, h: (b, h, 0)),
        ],
        out_specs=pl.BlockSpec((1, 1, 40, _LANE), lambda b, h: (b, h, 0, 0)),
        compiler_params=pltpu.CompilerParams(
            dimension_semantics=("parallel", "parallel"),
            vmem_limit_bytes=_VMEM_LIMIT),
        cost_estimate=cost,
    )(logits_t, label_t, is1_t)

    # Tiny finalization in plain JAX: reduce vector partials to 5 scalars/batch.
    s = parts.reshape(B, n_tiles, 5, 8, _LANE).sum(axis=(1, 3, 4))  # (B, 5)
    intersect, pred_sum, label_sum, ce_num, ce_den = (s[:, i] for i in range(5))

    dice_score = (2.0 * intersect + smooth) / (pred_sum + label_sum + smooth)
    dice_loss = 1.0 - jnp.mean(dice_score)
    # F.cross_entropy with weight=[0,1,0,...]: mean of -log p1 over pixels whose
    # argmax label is 1, normalized by the sum of per-pixel weights. Like the
    # PyTorch reference, this is NaN if ce_den == 0 while label_sum > 0
    # (non-one-hot targets) -- kept unguarded to mirror the module's semantics.
    ce_loss = jnp.sum(ce_num) / jnp.sum(ce_den)

    loss = dice_loss + ce_loss
    # if label.sum() == 0: return 0.0
    return jnp.where(jnp.sum(label_sum) == 0.0, jnp.float32(0.0), loss)
    # TODO(synk): debug_saver (host-side numpy .npy dump + call_counter state)
    # is I/O and is not reproduced in the kernel.


def _ref_loss(logits, targets, smooth=SMOOTH):
    """Pure-JAX reference mirroring the PyTorch forward."""
    probs = jax.nn.softmax(logits, axis=1)
    t = jnp.transpose(targets, (0, 3, 1, 2))
    pred = probs[:, 1]
    label = t[:, 1].astype(jnp.float32)
    intersect = jnp.sum(pred * label, axis=(1, 2))
    union = jnp.sum(pred, axis=(1, 2)) + jnp.sum(label, axis=(1, 2))
    dice = (2.0 * intersect + smooth) / (union + smooth)
    dice_loss = 1.0 - jnp.mean(dice)
    y = jnp.argmax(t, axis=1)
    logp = jax.nn.log_softmax(logits, axis=1)
    w = (y == 1).astype(jnp.float32)
    ce = jnp.sum(w * (-logp[:, 1])) / jnp.sum(w)
    loss = dice_loss + ce
    return jnp.where(jnp.sum(label) == 0.0, jnp.float32(0.0), loss)


if __name__ == "__main__":
    key = jax.random.PRNGKey(0)

    def make_inputs(k, B, C, H, W, logits_dtype):
        k_logits, k_cls = jax.random.split(k)
        logits = jax.random.normal(k_logits, (B, C, H, W), dtype=jnp.float32)
        logits = logits.astype(logits_dtype)
        classes = jax.random.randint(k_cls, (B, H, W), 0, C)
        targets = jax.nn.one_hot(classes, C, dtype=jnp.float32)  # [B, H, W, C]
        return logits, targets

    cases = [
        # (B, C, H, W, logits dtype)
        (2, 4, 16, 16, jnp.float32),    # small aligned case (primary shape)
        (1, 4, 80, 80, jnp.bfloat16),   # bf16 logits, B=1 megacore split, ragged-tile mask
        (2, 3, 10, 10, jnp.float32),    # H*W not a multiple of 128 (lane pad + mask)
    ]
    for i, (B, C, H, W, dt) in enumerate(cases):
        key, sub = jax.random.split(key)
        logits, targets = make_inputs(sub, B, C, H, W, dt)
        got = jax.block_until_ready(channel1_loss(logits, targets))
        want = jax.block_until_ready(
            _ref_loss(logits.astype(jnp.float32), targets))
        # 2e-3 tolerance: the kernel uses the approximate EUP reciprocal
        # (~2^-12 relative) for the softmax denominator.
        assert jnp.allclose(got, want, atol=2e-3, rtol=2e-3), (i, got, want)

    print("KERNEL_OK")
</pallas_src>

<mosaic_0001>
module attributes {stable_mosaic.version = 11 : i64} {
  func.func @kernel(%arg0: i32, %arg1: i32, %arg2: memref<1x4x2x128xf32, #tpu.memory_space<vmem>>, %arg3: memref<1x2x128xbf16, #tpu.memory_space<vmem>>, %arg4: memref<1x2x128xbf16, #tpu.memory_space<vmem>>, %arg5: memref<1x1x40x128xf32, #tpu.memory_space<vmem>>) attributes {dimension_semantics = [#tpu.dimension_semantics<parallel>, #tpu.dimension_semantics<parallel>], iteration_bounds = array<i64: 2, 1>, scalar_prefetch = 0 : i64, scratch_operands = 0 : i64, tpu.core_type = #tpu.core_type<tc>, window_params = [{transform_indices = @transform_0, window_bounds = array<i64: 1, 4, 2, 128>}, {transform_indices = @transform_1, window_bounds = array<i64: 1, 2, 128>}, {transform_indices = @transform_2, window_bounds = array<i64: 1, 2, 128>}, {transform_indices = @transform_3, window_bounds = array<i64: 1, 1, 40, 128>}]} {
    %c0 = arith.constant 0 : index
    %c0_0 = arith.constant 0 : index
    %c0_1 = arith.constant 0 : index
    %c0_2 = arith.constant 0 : index
    %0 = vector.load %arg2[%c0, %c0_0, %c0_1, %c0_2] : memref<1x4x2x128xf32, #tpu.memory_space<vmem>>, vector<1x1x2x128xf32>
    %1 = vector.shape_cast %0 : vector<1x1x2x128xf32> to vector<2x128xf32>
    %c0_3 = arith.constant 0 : index
    %c1 = arith.constant 1 : index
    %c0_4 = arith.constant 0 : index
    %c0_5 = arith.constant 0 : index
    %2 = vector.load %arg2[%c0_3, %c1, %c0_4, %c0_5] : memref<1x4x2x128xf32, #tpu.memory_space<vmem>>, vector<1x1x2x128xf32>
    %3 = vector.shape_cast %2 : vector<1x1x2x128xf32> to vector<2x128xf32>
    %c0_6 = arith.constant 0 : index
    %c2 = arith.constant 2 : index
    %c0_7 = arith.constant 0 : index
    %c0_8 = arith.constant 0 : index
    %4 = vector.load %arg2[%c0_6, %c2, %c0_7, %c0_8] : memref<1x4x2x128xf32, #tpu.memory_space<vmem>>, vector<1x1x2x128xf32>
    %5 = vector.shape_cast %4 : vector<1x1x2x128xf32> to vector<2x128xf32>
    %c0_9 = arith.constant 0 : index
    %c3 = arith.constant 3 : index
    %c0_10 = arith.constant 0 : index
    %c0_11 = arith.constant 0 : index
    %6 = vector.load %arg2[%c0_9, %c3, %c0_10, %c0_11] : memref<1x4x2x128xf32, #tpu.memory_space<vmem>>, vector<1x1x2x128xf32>
    %7 = vector.shape_cast %6 : vector<1x1x2x128xf32> to vector<2x128xf32>
    %8 = arith.maximumf %1, %3 : vector<2x128xf32>
    %9 = arith.maximumf %8, %5 : vector<2x128xf32>
    %10 = arith.maximumf %9, %7 : vector<2x128xf32>
    %11 = arith.subf %3, %10 : vector<2x128xf32>
    %12 = math.exp %11 : vector<2x128xf32>
    %13 = arith.subf %1, %10 : vector<2x128xf32>
    %14 = math.exp %13 : vector<2x128xf32>
    %15 = arith.addf %14, %12 : vector<2x128xf32>
    %16 = arith.subf %5, %10 : vector<2x128xf32>
    %17 = math.exp %16 : vector<2x128xf32>
    %18 = arith.addf %15, %17 : vector<2x128xf32>
    %19 = arith.subf %7, %10 : vector<2x128xf32>
    %20 = math.exp %19 : vector<2x128xf32>
    %21 = arith.addf %18, %20 : vector<2x128xf32>
    %22 = tpu.reciprocal %21 {approx = true} : vector<2x128xf32> -> vector<2x128xf32>
    %23 = arith.mulf %12, %22 : vector<2x128xf32>
    %24 = math.log %21 : vector<2x128xf32>
    %25 = arith.subf %24, %11 : vector<2x128xf32>
    %c0_12 = arith.constant 0 : index
    %c0_13 = arith.constant 0 : index
    %c0_14 = arith.constant 0 : index
    %26 = vector.load %arg3[%c0_12, %c0_13, %c0_14] : memref<1x2x128xbf16, #tpu.memory_space<vmem>>, vector<1x2x128xbf16>
    %27 = vector.shape_cast %26 : vector<1x2x128xbf16> to vector<2x128xbf16>
    %28 = arith.extf %27 : vector<2x128xbf16> to vector<2x128xf32>
    %c0_15 = arith.constant 0 : index
    %c0_16 = arith.constant 0 : index
    %c0_17 = arith.constant 0 : index
    %29 = vector.load %arg4[%c0_15, %c0_16, %c0_17] : memref<1x2x128xbf16, #tpu.memory_space<vmem>>, vector<1x2x128xbf16>
    %30 = vector.shape_cast %29 : vector<1x2x128xbf16> to vector<2x128xbf16>
    %31 = arith.extf %30 : vector<2x128xbf16> to vector<2x128xf32>
    %32 = arith.mulf %23, %28 : vector<2x128xf32>
    %33 = arith.mulf %31, %25 : vector<2x128xf32>
    %cst = arith.constant 0.000000e+00 : f32
    %34 = vector.broadcast %cst : f32 to vector<1x1x40x128xf32>
    %c0_18 = arith.constant 0 : index
    %c0_19 = arith.constant 0 : index
    %c0_20 = arith.constant 0 : index
    %c0_21 = arith.constant 0 : index
    %35 = vector.load %arg5[%c0_18, %c0_19, %c0_20, %c0_21] : memref<1x1x40x128xf32, #tpu.memory_space<vmem>>, vector<1x1x40x128xf32>
    tpu.vector_store %arg5[%c0_18, %c0_19, %c0_20, %c0_21], %34 {strides = array<i32>} : memref<1x1x40x128xf32, #tpu.memory_space<vmem>>, vector<1x1x40x128xf32>,
    %c0_22 = arith.constant 0 : index
    %c0_23 = arith.constant 0 : index
    %c0_24 = arith.constant 0 : index
    %c0_25 = arith.constant 0 : index
    %36 = vector.load %arg5[%c0_22, %c0_23, %c0_24, %c0_25] : memref<1x1x40x128xf32, #tpu.memory_space<vmem>>, vector<1x1x2x128xf32>
    %37 = vector.shape_cast %36 : vector<1x1x2x128xf32> to vector<2x128xf32>
    %38 = vector.shape_cast %32 : vector<2x128xf32> to vector<1x1x2x128xf32>
    tpu.vector_store %arg5[%c0_22, %c0_23, %c0_24, %c0_25], %38 {strides = array<i32>} : memref<1x1x40x128xf32, #tpu.memory_space<vmem>>, vector<1x1x2x128xf32>,
    %c0_26 = arith.constant 0 : index
    %c0_27 = arith.constant 0 : index
    %c8 = arith.constant 8 : index
    %c0_28 = arith.constant 0 : index
    %39 = vector.load %arg5[%c0_26, %c0_27, %c8, %c0_28] : memref<1x1x40x128xf32, #tpu.memory_space<vmem>>, vector<1x1x2x128xf32>
    %40 = vector.shape_cast %39 : vector<1x1x2x128xf32> to vector<2x128xf32>
    %41 = vector.shape_cast %23 : vector<2x128xf32> to vector<1x1x2x128xf32>
    tpu.vector_store %arg5[%c0_26, %c0_27, %c8, %c0_28], %41 {strides = array<i32>} : memref<1x1x40x128xf32, #tpu.memory_space<vmem>>, vector<1x1x2x128xf32>,
    %c0_29 = arith.constant 0 : index
    %c0_30 = arith.constant 0 : index
    %c16 = arith.constant 16 : index
    %c0_31 = arith.constant 0 : index
    %42 = vector.load %arg5[%c0_29, %c0_30, %c16, %c0_31] : memref<1x1x40x128xf32, #tpu.memory_space<vmem>>, vector<1x1x2x128xf32>
    %43 = vector.shape_cast %42 : vector<1x1x2x128xf32> to vector<2x128xf32>
    %44 = vector.shape_cast %28 : vector<2x128xf32> to vector<1x1x2x128xf32>
    tpu.vector_store %arg5[%c0_29, %c0_30, %c16, %c0_31], %44 {strides = array<i32>} : memref<1x1x40x128xf32, #tpu.memory_space<vmem>>, vector<1x1x2x128xf32>,
    %c0_32 = arith.constant 0 : index
    %c0_33 = arith.constant 0 : index
    %c24 = arith.constant 24 : index
    %c0_34 = arith.constant 0 : index
    %45 = vector.load %arg5[%c0_32, %c0_33, %c24, %c0_34] : memref<1x1x40x128xf32, #tpu.memory_space<vmem>>, vector<1x1x2x128xf32>
    %46 = vector.shape_cast %45 : vector<1x1x2x128xf32> to vector<2x128xf32>
    %47 = vector.shape_cast %33 : vector<2x128xf32> to vector<1x1x2x128xf32>
    tpu.vector_store %arg5[%c0_32, %c0_33, %c24, %c0_34], %47 {strides = array<i32>} : memref<1x1x40x128xf32, #tpu.memory_space<vmem>>, vector<1x1x2x128xf32>,
    %c0_35 = arith.constant 0 : index
    %c0_36 = arith.constant 0 : index
    %c32 = arith.constant 32 : index
    %c0_37 = arith.constant 0 : index
    %48 = vector.load %arg5[%c0_35, %c0_36, %c32, %c0_37] : memref<1x1x40x128xf32, #tpu.memory_space<vmem>>, vector<1x1x2x128xf32>
    %49 = vector.shape_cast %48 : vector<1x1x2x128xf32> to vector<2x128xf32>
    %50 = vector.shape_cast %31 : vector<2x128xf32> to vector<1x1x2x128xf32>
    tpu.vector_store %arg5[%c0_35, %c0_36, %c32, %c0_37], %50 {strides = array<i32>} : memref<1x1x40x128xf32, #tpu.memory_space<vmem>>, vector<1x1x2x128xf32>,
    return
  }
  func.func @transform_0(%arg0: i32, %arg1: i32) -> (i32, i32, i32, i32) {
    %c0_i32 = arith.constant 0 : i32
    %c0_i32_0 = arith.constant 0 : i32
    %c0_i32_1 = arith.constant 0 : i32
    return %arg0, %c0_i32, %arg1, %c0_i32_0 : i32, i32, i32, i32
  }
  func.func @transform_1(%arg0: i32, %arg1: i32) -> (i32, i32, i32) {
    %c0_i32 = arith.constant 0 : i32
    %c0_i32_0 = arith.constant 0 : i32
    return %arg0, %arg1, %c0_i32 : i32, i32, i32
  }
  func.func @transform_2(%arg0: i32, %arg1: i32) -> (i32, i32, i32) {
    %c0_i32 = arith.constant 0 : i32
    %c0_i32_0 = arith.constant 0 : i32
    return %arg0, %arg1, %c0_i32 : i32, i32, i32
  }
  func.func @transform_3(%arg0: i32, %arg1: i32) -> (i32, i32, i32, i32) {
    %c0_i32 = arith.constant 0 : i32
    %c0_i32_0 = arith.constant 0 : i32
    %c0_i32_1 = arith.constant 0 : i32
    return %arg0, %arg1, %c0_i32, %c0_i32_0 : i32, i32, i32, i32
  }
}

</mosaic_0001>

<bundles_post_ra>
// kernel: tpu_custom_call.1
= control target key start
LH: loop header
LB: loop body
LE: loop exit
PB: predicated region body
PF: predicated region fallthrough
CT: control target
= control target key end

     0   :  { %s954_s0 = inlined_call_operand.hbm [shape: f32[2,4,2,128], index: 0, kind: input, shape index: {}]   ;;  %s955_s1 = inlined_call_operand.hbm [shape: bf16[2,2,128], index: 1, kind: input, shape index: {}]   ;;  %s956_s2 = inlined_call_operand.hbm [shape: bf16[2,2,128], index: 2, kind: input, shape index: {}]   ;;  %s957_s3 = inlined_call_operand.hbm [shape: f32[2,1,40,128], index: 3, kind: output, shape index: {}]  }
   0x1   :  { %963 = sst [smem:[#allocation17_spill]] %s955_s1 }
   0x2   :  { %8 = vsyncpa [#allocation3], 0 }
   0x3   :  { %10 = vsyncpa [#allocation3 + $0x1], 0 }
   0x4   :  { %11 = vsyncpa [#allocation6], 0 }
   0x5   :  { %13 = vsyncpa [#allocation6 + $0x1], 0 }
   0x6   :  { %14 = vsyncpa [#allocation4], 0 }
   0x7   :  { %16 = vsyncpa [#allocation4 + $0x1], 0  ;;  %s778_s12 = smov 0   ;;  %s780_s13 = smov 0  }
   0x8   :  { %s782_s14 = smov 0   ;;  %s784_s15 = smov 0  }
   0x9   :  { %s786_s16 = smov 0   ;;  %s788_s17 = smov 0  }
   0xa LB: > { %964 = sst [smem:[#allocation12_spill]] %s739_s14  ;;  %s809_s18 = sadd.s32 4294967295, %s751_s17   ;;  %s751_s17 = sphi %s788_s17, %s22_s17   ;;  %s747_s16 = sphi %s786_s16, %s984_s16   ;;  %s743_s15 = sphi %s784_s15, %s983_s15   ;;  %s739_s14 = sphi %s782_s14, %s979_s14   ;;  %s735_s13 = sphi %s780_s13, %s982_s13   ;;  %s731_s12 = sphi %s778_s12, %s981_s12  }
   0xb   : > { %965 = sst [smem:[#allocation13_spill]] %s751_s17  ;;  %s469_s19 = sadd.s32 4294967294, %s751_s17  }
   0xc   : > { %s34_s20 = sadd.s32 1, %s747_s16  ;;  %s43_s21 = sadd.s32 1, %s739_s14 }
   0xd   : > { %p36_p0 = scmp.ge.s32.totalorder %s34_s20, 2  ;;  %p50_p1 = scmp.ne.s32.totalorder %s739_s14, %s735_s13 }
   0xe   : > { %p51_p2 = scmp.eq.s32.totalorder %s751_s17, 0  ;;  %p56_p3 = scmp.ne.s32.totalorder %s735_s13, %s731_s12 }
   0xf   : > { %s986_s20 = smov (%p36_p0, %s34_s20), 0  ;;  %p57_p5 = scmp.eq.s32.totalorder %s809_s18, 0 }
  0x10   : > { %966 = sst [smem:[#allocation14_spill]] %s986_s20  ;;  %p821_p4 = por %p51_p2, %p50_p1 }
  0x11   : > { %s38_s23 = ssub.s32 %s747_s16, %s986_s20  ;;  %p138_p6 = scmp.eq.s32.totalorder %s809_s18, 1 }
  0x12   : > { %p41_p7 = scmp.eq.s32.totalorder %s38_s23, 0  ;;  %p829_p8 = por %p57_p5, %p56_p3 }
  0x13   : > { %p833_p9 = por %p138_p6, %p50_p1  ;;  %p144_p10 = scmp.eq.s32.totalorder %s469_s19, 1 }
  0x14   : > { %s838_s26 = scalar_select %p41_p7, %s739_s14, %s43_s21  }
  0x15   : > { %p840_p11 = por %p144_p10, %p56_p3  ;;  %p471_p12 = scmp.ge.s32.totalorder %s751_s17, 2 }
  0x16   : > { %970 = sst [smem:[#allocation15_spill]] %s838_s26  ;;  %p508_p13 = scmp.lt.s32.totalorder %s751_s17, 2 }
  0x17   : > { %s971_s27 = scalar_select %p840_p11, 1, 0 }
  0x18   : > { %s847_s28 = sand.u32 1, %s739_s14   ;;  %s187_s29 = sand.u32 1, %s751_s17  }
  0x19   : > { %972 = sst [smem:[#allocation16_spill]] %s971_s27  ;;  %p852_p0 = pnand %p508_p13, %p821_p4 }
  0x1a   : > { %s974_s1 = sld [smem:[#allocation17_spill]]  ;;  %s190_s7 = scalar_lea.vmem [#allocation5], %s847_s28 }
  0x1b   : > { %s198_s8 = sshll.u32 %s190_s7, 4  ;;  %s188_s10 = scalar_lea.sflag [#allocation6], %s187_s29  ;;  %s199_s8 = int_to_ptr.vmem [resolvable:$true] %s198_s8 }
  0x1c   : > { %p475_p1 = scmp.ge.s32.totalorder %s751_s17, 1  ;;  %p221_p2 = scmp.lt.s32.totalorder %s751_s17, 3 }
  0x1d   : > { %s472_s19 = sshll.u32 %s847_s28, 3  ;;  %s483_s21 = sshll.u32 %s747_s16, 3 }
  0x1e   : > { %p865_p3 = pnand %p475_p1, %p221_p2  ;;  %s174_s4 = scalar_lea.hbm %s954_s0, %s483_s21 }
  0x1f   : > { %s175_s5 = sshll.u32 %s174_s4, 4  ;;  %s168_s29 = scalar_lea.vmem [#allocation2], %s472_s19  ;;  %s176_s5 = int_to_ptr.hbm [resolvable:$true] %s175_s5 }
  0x20   : > { %s194_s6 = scalar_lea.hbm %s974_s1, %s747_s16  ;;  %s165_s7 = scalar_lea.sflag [#allocation3], %s847_s28 }
  0x21   : > { %s196_s9 = sshll.u32 %s194_s6, 4  ;;  %s177_s6 = sshll.u32 %s168_s29, 4  ;;  %s197_s9 = int_to_ptr.hbm [resolvable:$true] %s196_s9  ;;  %s178_s6 = int_to_ptr.vmem [resolvable:$true] %s177_s6 }
  0x22   : > { %500 = dma.hbm_to_vmem [thread:$0]  (!%p852_p0), %s197_s9, 16, %s199_s8, %s188_s10  }
  0x23   : > { %s753_s8 = smov 32   ;;  %s754_s9 = smov 2  }
  0x24   : > { %497 = dma.hbm_to_vmem [thread:$0]  (!%p852_p0), %s176_s5, 128, %s178_s6, %s165_s7, %s753_s8, %s753_s8, %s754_s9  }
  0x25   : > { %s212_s26 = scalar_lea.hbm %s956_s2, %s747_s16  ;;  %s208_s17 = scalar_lea.vmem [#allocation7], %s847_s28 }
  0x26   : > { %s214_s14 = sshll.u32 %s212_s26, 4  ;;  %s216_s27 = sshll.u32 %s208_s17, 4  ;;  %s215_s14 = int_to_ptr.hbm [resolvable:$true] %s214_s14  ;;  %s217_s27 = int_to_ptr.vmem [resolvable:$true] %s216_s27 }
  0x27   : > { %503 = dma.hbm_to_vmem [thread:$0]  (!%p852_p0), %s215_s14, 16, %s217_s27, %s188_s10  }
  0x28   : > { %225 = sbr.rel (%p865_p3) target bundleno = 93 (0x5d), region = 32  ;;  %s887_s19 = sand.u32 (!%p865_p3), 1, %s735_s13  }
  0x29   : > { %s476_s21 = sshll.u32 (!%p865_p3), %s887_s19, 3  ;;  %s228_s22 = scalar_lea.sflag (!%p865_p3), [#allocation3], %s887_s19 }
  0x2a   : > { %s231_s1 = scalar_lea.vmem (!%p865_p3), [#allocation2], %s476_s21 }
  0x2d   : > { %718 = dma.done.wait (%p829_p8), %s228_s22, 128  }
  0x2e   : > { %720 = vsyncadd (%p829_p8), %s228_s22, 4294967168  ;;  %s237_s14 = sand.u32 1, %s809_s18   ;;  %s240_s20 = scalar_lea.vmem [#allocation5], %s887_s19 }
  0x2f   : > { %s238_s17 = scalar_lea.sflag [#allocation6], %s237_s14 }
  0x30   : > { %722 = dma.done.wait (%p829_p8), %s238_s17, 32  }
  0x31   : > { %724 = vsyncadd (%p829_p8), %s238_s17, 4294967264  ;;  %s484_s26 = smul.u32 40, %s887_s19  ;;  %v755_v0 = vmov 0.0   ;;  %v281_v1 = vld [vmem:[%s231_s1] sm:$0x3]  ;;  %s249_s18 = scalar_lea.vmem [#allocation7], %s887_s19 }
  0x32   : > { %v477_v2 = vld [vmem:[%s231_s1 + $0x2] sm:$0x3]  ;;  %v478_v3 = vld [vmem:[%s231_s1 + $0x4] sm:$0x3]  ;;  %v311_v5 = vld [vmem:[%s240_s20] sm:$0x1] }
  0x33   : > { %s902_s27 = scalar_lea.vmem [#allocation8], %s484_s26  ;;  %v288_v4 = vmax.f32 %v281_v1, %v477_v2  ;;  %v479_v6 = vld [vmem:[%s231_s1 + $0x6] sm:$0x3]  ;;  %v312_v7 = vunpack.c.l.bf16 %v311_v5  ;;  %v313_v8 = vld [vmem:[%s249_s18] sm:$0x1]  ;;  %s485_s24 = smul.u32 40, %s743_s15 }
  0x34   : > { %317 = vst [vmem:[%s902_s27] sm:$0xff] %v755_v0  ;;  %v314_v10 = vunpack.c.l.bf16 %v313_v8  ;;  %s342_s11 = sshll.u32 %s902_s27, 4  ;;  %s328_s15 = scalar_lea.sflag [#allocation4], %s887_s19  ;;  %s343_s11 = int_to_ptr.vmem [resolvable:$true] %s342_s11 }
  0x35   : > { %318 = vst [vmem:[%s902_s27 + $0x8] sm:$0xff] %v755_v0  ;;  %v289_v9 = vmax.f32 %v288_v4, %v478_v3  ;;  %s341_s10 = scalar_lea.hbm %s957_s3, %s485_s24  ;;  %s685_s7 = scalar_lea.hbm %s957_s3, 80 }
  0x36   : > { %319 = vst [vmem:[%s902_s27 + $0x10] sm:$0xff] %v755_v0  ;;  %s344_s23 = sshll.u32 %s341_s10, 4  ;;  %s345_s23 = int_to_ptr.hbm [resolvable:$true] %s344_s23 }
  0x37   : > { %320 = vst [vmem:[%s902_s27 + $0x18] sm:$0xff] %v755_v0  ;;  %v290_v11 = vmax.f32 %v289_v9, %v479_v6  ;;  %s679_s4 = sshra.s32 %s345_s23, 4  ;;  %s680_s4 = int_to_ptr.hbm [resolvable:$true] %s679_s4 }
  0x38   : > { %321 = vst [vmem:[%s902_s27 + $0x20] sm:$0xff] %v755_v0  ;;  %s681_s5 = scalar_lea.hbm %s680_s4, 40  ;;  %p686_p7 = scmp.lt.s32.totalorder %s680_s4, %s957_s3 }
  0x39   : > { %324 = vst [vmem:[%s902_s27 + $0x10] sm:$0x3] %v312_v7  ;;  %v291_v12 = vsub.f32 %v477_v2, %v290_v11  ;;  %v294_v13 = vsub.f32 %v281_v1, %v290_v11  ;;  %v298_v14 = vsub.f32 %v478_v3, %v290_v11  ;;  %v302_v15 = vsub.f32 %v479_v6, %v290_v11  ;;  %p682_p4 = scmp.ne.s32.totalorder %s680_s4, %s681_s5  ;;  %p687_p8 = scmp.lt.s32.totalorder %s685_s7, %s681_s5 }
  0x3a   : > { %326 = vst [vmem:[%s902_s27 + $0x20] sm:$0x3] %v314_v10 }
  0x3b   : > { %v292_v16 = vmul.f32 1.442695, %v291_v12  ;;  %v295_v17 = vmul.f32 1.442695, %v294_v13  ;;  %v299_v18 = vmul.f32 1.442695, %v298_v14  ;;  %p683_p5 = pnand %p682_p4, %p833_p9  ;;  %p688_p10 = por %p687_p8, %p686_p7 }
  0x3c   : > { %v303_v19 = vmul.f32 1.442695, %v302_v15 }
  0x3d   : > { %563 = vpow2.f32 %v292_v16  ;;  %p684_p6 = pneg %p683_p5 }
  0x3e   : > { %565 = vpow2.f32 %v295_v17 }
  0x3f   : > { %567 = vpow2.f32 %v299_v18  ;;  %p689_p13 = pnand %p688_p10, %p684_p6 }
  0x40   : > { %569 = vpow2.f32 %v303_v19 }
  0x43   : > { %v564_v20 = vpop.eup %563 }
  0x44   : > { %v566_v21 = vpop.eup %565 }
  0x45   : > { %v568_v22 = vpop.eup %567  ;;  %v297_v23 = vadd.f32 %v566_v21, %v564_v20 }
  0x46   : > { %v570_v24 = vpop.eup %569 }
  0x47   : > { %v301_v25 = vadd.f32 %v568_v22, %v297_v23 }
  0x49   : > { %v305_v26 = vadd.f32 %v570_v24, %v301_v25 }
  0x4b   : > { %571 = vrcp.f32 %v305_v26 }
  0x4c   : > { %573 = vlog2.f32 %v305_v26 }
  0x51   : > { %v572_v27 = vpop.eup %571 }
  0x52   : > { %v574_v28 = vpop.eup %573  ;;  %v307_v29 = vmul.f32 %v572_v27, %v564_v20 }
  0x53   : > { %v309_v30 = vmul.f32 0.6931472, %v574_v28 }
  0x54   : > { %v315_v31 = vmul.f32 %v312_v7, %v307_v29  ;;  %323 = vst [vmem:[%s902_s27 + $0x8] sm:$0x3] %v307_v29 }
  0x55   : > { %v310_v32 = vsub.f32 %v309_v30, %v291_v12 }
  0x56   : > { %322 = vst [vmem:[%s902_s27] sm:$0x3] %v315_v31 }
  0x57   : > { %v316_v33 = vmul.f32 %v314_v10, %v310_v32 }
  0x59   : > { %325 = vst [vmem:[%s902_s27 + $0x18] sm:$0x3] %v316_v33 }
  0x5a   : > { %692 = shalt.err (!%p689_p13)
}
  0x5b   : > { %s756_s19 = smov 128   ;;  %s757_s21 = smov 8  }
  0x5c   : > { %492 = dma.vmem_to_hbm [thread:$0]  (%p833_p9), %s343_s11, 640, %s345_s23, %s328_s15, %s756_s19, %s756_s19, %s757_s21  }
  0x5d PF: > { %s977_s1 = sld [smem:[#allocation13_spill]]  ;;  %s359_s14 = sand.u32 1, %s731_s12  }
  0x5e   : > { %p505_p0 = pnand %p471_p12, %p840_p11  ;;  %s360_s17 = scalar_lea.sflag [#allocation4], %s359_s14 }
  0x60   : > { %p506_p1 = pneg %p505_p0 }
  0x62   : > { %726 = dma.done.wait (%p506_p1), %s360_s17, 640  }
  0x63   : > { %728 = vsyncadd (%p506_p1), %s360_s17, 4294966656  ;;  %s22_s17 = sadd.s32 1, %s977_s1   ;;  %s978_s20 = sld [smem:[#allocation12_spill]] }
  0x64   : > { %p19_p2 = scmp.ge.s32.totalorder %s22_s17, 4   ;;  %s979_s14 = sld [smem:[#allocation15_spill]] }
  0x65   : > { %s980_s25 = sld [smem:[#allocation14_spill]]  ;;  %s981_s12 = smov %s735_s13 }
  0x66   : > { %s983_s15 = smov %s747_s16 }
  0x67   :  { %21 = sbr.rel (!%p19_p2) target bundleno = 10 (0xa), region = 104 }
  0x69   : > { %s982_s13 = smov %s978_s20 }
  0x6b   : > { %s984_s16 = smov %s980_s25 }
  0x6c   :  { %366 = vsyncpa [#allocation3], 1 }
  0x6d   :  { %368 = vsyncpa [#allocation3 + $0x1], 1 }
  0x6e   :  { %369 = vsyncpa [#allocation6], 1 }
  0x6f   :  { %371 = vsyncpa [#allocation6 + $0x1], 1 }
  0x70   :  { %372 = vsyncpa [#allocation4], 1 }
  0x71   :  { %374 = vsyncpa [#allocation4 + $0x1], 1 }

</bundles_post_ra>
